<compile_context>
chip_gen: v7x
topology: tpu7x:2x2x1
jax: 0.10.0
libtpu: 0.0.40
codegen_flags: <defaults>
</compile_context>

<pallas_src>
import functools

import jax
import jax.numpy as jnp
from jax.experimental import pallas as pl
from jax.experimental.pallas import tpu as pltpu


LANE = 128   # TPU lane width: channel dims are padded to a multiple of this
WPAD = 8     # sublane-aligned offset of the interior inside the W-padded scratch


# ----------------------------- Pallas kernel --------------------------------
def _stem_fused_kernel(p1_ref, w1_ref, b1_ref, w2_ref, b2_ref, o_ref, ypad_ref,
                       *, oh, ow, cp):
    """Fused conv1(stride2)+BN1+ReLU+conv2(stride1)+BN2 for one image.

    p1_ref : (1, oh*ow, 9*Cin) bf16  conv1 im2col patches (tap-major, ch-minor)
    w1_ref : (9*Cin, cp)       bf16  conv1 weight, BN1 scale folded in
    b1_ref : (1, cp)           f32   conv1 bias,   BN1 folded in
    w2_ref : (9, cp, cp)       bf16  conv2 per-tap weights, BN2 scale folded in
    b2_ref : (1, cp)           f32   conv2 bias,   BN2 folded in
    o_ref  : (1, oh*ow, cp)    f32   lane-dense (channel-padded) output
    ypad_ref: (oh+2, ow+2*WPAD, cp) f32 scratch holding the zero-haloed
              intermediate activation.  The interior is stored at sublane
              offset WPAD (tile-aligned store); conv2 taps read at offsets
              WPAD-1 .. WPAD+1 and pick up physical zeros at the borders.
    """
    # ---- conv1 + BN1 + ReLU: one (M, 9*Cin) @ (9*Cin, cp) MXU matmul --------
    y1 = jnp.dot(p1_ref[0], w1_ref[...], preferred_element_type=jnp.float32)
    y1 = jnp.maximum(y1 + b1_ref[...], 0.0)                    # (oh*ow, cp) f32

    # ---- stage intermediate activation in VMEM with a zero halo (padding=1) -
    ypad_ref[...] = jnp.zeros_like(ypad_ref)
    ypad_ref[1:oh + 1, WPAD:WPAD + ow, :] = y1.reshape(oh, ow, cp)

    # ---- conv2 + BN2: nine shifted (M, cp) @ (cp, cp) matmuls, f32 accum ----
    acc = jnp.zeros((oh * ow, cp), jnp.float32)
    for t in range(9):
        kh, kw = t // 3, t % 3
        tap = ypad_ref[kh:kh + oh, WPAD - 1 + kw:WPAD - 1 + kw + ow, :]
        tap = tap.reshape(oh * ow, cp).astype(jnp.bfloat16)
        acc = acc + jnp.dot(tap, w2_ref[t], preferred_element_type=jnp.float32)

    o_ref[0] = (acc + b2_ref[...]).astype(o_ref.dtype)


# ------------------------------ JAX wrapper ----------------------------------
def _fold_bn(conv_bias, gamma, beta, mean, var, eps=1e-5):
    scale = gamma / jnp.sqrt(var + eps)
    bias = (conv_bias - mean) * scale + beta
    return scale, bias


def _im2col_3x3_s2_nhwc(x):
    """x: (N, H, W, C) -> patches (N, OH*OW, 9*C), ordering (kh, kw, c)."""
    N, H, W, C = x.shape
    OH = (H + 2 - 3) // 2 + 1
    OW = (W + 2 - 3) // 2 + 1
    xp = jnp.pad(x, ((0, 0), (1, 1), (1, 1), (0, 0)))
    taps = [xp[:, i:i + 2 * OH:2, j:j + 2 * OW:2, :]
            for i in range(3) for j in range(3)]
    p = jnp.stack(taps, axis=3)                       # (N, OH, OW, 9, C)
    return p.reshape(N, OH * OW, 9 * C), OH, OW


def stem_forward(x, params):
    """x: (N, Cin, H, W) NCHW f32 -> (N, Cout, H//2, W//2) NCHW f32."""
    N, Cin, H, W = x.shape
    Cout = params["w1"].shape[0]
    CP = ((Cout + LANE - 1) // LANE) * LANE           # lane-dense channel pad

    # conv1 im2col in XLA is cheap (K = 9*Cin is tiny); the wide conv2 stays
    # fully inside the fused kernel. Activations are NHWC end-to-end.
    x_nhwc = jnp.transpose(x, (0, 2, 3, 1))
    p1, OH, OW = _im2col_3x3_s2_nhwc(x_nhwc)
    p1 = p1.astype(jnp.bfloat16)
    M, K1 = OH * OW, 9 * Cin

    s1, b1 = _fold_bn(params["b1"], params["g1"], params["beta1"],
                      params["m1"], params["v1"])
    s2, b2 = _fold_bn(params["b2"], params["g2"], params["beta2"],
                      params["m2"], params["v2"])

    # Fold BN scales into the weights; zero-pad channels to CP (padded output
    # channels are exactly zero and are sliced off below).
    w1m = jnp.transpose(params["w1"], (2, 3, 1, 0)).reshape(K1, Cout) * s1[None, :]
    w1m = jnp.pad(w1m, ((0, 0), (0, CP - Cout))).astype(jnp.bfloat16)
    b1p = jnp.pad(b1, (0, CP - Cout)).reshape(1, CP).astype(jnp.float32)

    w2m = jnp.transpose(params["w2"], (2, 3, 1, 0)) * s2[None, None, None, :]
    w2m = jnp.pad(w2m, ((0, 0), (0, 0), (0, CP - Cout), (0, CP - Cout)))
    w2m = w2m.reshape(9, CP, CP).astype(jnp.bfloat16)
    b2p = jnp.pad(b2, (0, CP - Cout)).reshape(1, CP).astype(jnp.float32)

    kernel = functools.partial(_stem_fused_kernel, oh=OH, ow=OW, cp=CP)
    flops = N * (2 * M * K1 * CP + 9 * 2 * M * CP * CP)
    bytes_accessed = (p1.size * 2 + w1m.size * 2 + w2m.size * 2
                      + b1p.size * 4 + b2p.size * 4 + N * M * CP * 4)

    # TODO(synk): for large images the per-image intermediate no longer fits
    #             VMEM; the grid would then need a spatial row-tile axis with
    #             a 1-row halo in addition to the batch axis.
    y = pl.pallas_call(
        kernel,
        out_shape=jax.ShapeDtypeStruct((N, M, CP), jnp.float32),
        grid=(N,),
        in_specs=[
            pl.BlockSpec((1, M, K1), lambda n: (n, 0, 0)),
            pl.BlockSpec((K1, CP), lambda n: (0, 0)),       # resident weights
            pl.BlockSpec((1, CP), lambda n: (0, 0)),
            pl.BlockSpec((9, CP, CP), lambda n: (0, 0, 0)),
            pl.BlockSpec((1, CP), lambda n: (0, 0)),
        ],
        out_specs=pl.BlockSpec((1, M, CP), lambda n: (n, 0, 0)),
        scratch_shapes=[pltpu.VMEM((OH + 2, OW + 2 * WPAD, CP), jnp.float32)],
        compiler_params=pltpu.CompilerParams(
            dimension_semantics=("parallel",),
            vmem_limit_bytes=32 * 1024 * 1024),
        cost_estimate=pl.CostEstimate(flops=flops, transcendentals=0,
                                      bytes_accessed=bytes_accessed),
    )(p1, w1m, b1p, w2m, b2p)

    y = y[:, :, :Cout].reshape(N, OH, OW, Cout)
    return jnp.transpose(y, (0, 3, 1, 2))                 # back to NCHW


# ------------------------------ reference ------------------------------------
def stem_reference(x, params, eps=1e-5):
    """Pure-JAX f32 reference (lax conv) for correctness checking."""
    def bn(z, g, b, m, v):
        return g[None, :, None, None] * (z - m[None, :, None, None]) \
            / jnp.sqrt(v[None, :, None, None] + eps) + b[None, :, None, None]

    dn = ("NCHW", "OIHW", "NCHW")
    z = jax.lax.conv_general_dilated(x, params["w1"], (2, 2), ((1, 1), (1, 1)),
                                     dimension_numbers=dn)
    z = z + params["b1"][None, :, None, None]
    z = bn(z, params["g1"], params["beta1"], params["m1"], params["v1"])
    z = jnp.maximum(z, 0.0)
    z = jax.lax.conv_general_dilated(z, params["w2"], (1, 1), ((1, 1), (1, 1)),
                                     dimension_numbers=dn)
    z = z + params["b2"][None, :, None, None]
    z = bn(z, params["g2"], params["beta2"], params["m2"], params["v2"])
    return z


def init_params(key, in_dim, out_dim):
    ks = jax.random.split(key, 6)
    return {
        # conv weights, PyTorch layout (Cout, Cin, KH, KW)
        "w1": jax.random.normal(ks[0], (out_dim, in_dim, 3, 3), jnp.float32) * 0.1,
        "b1": jax.random.normal(ks[1], (out_dim,), jnp.float32) * 0.1,
        "w2": jax.random.normal(ks[2], (out_dim, out_dim, 3, 3), jnp.float32) * 0.1,
        "b2": jax.random.normal(ks[3], (out_dim,), jnp.float32) * 0.1,
        # BN1 (gamma, beta, running_mean, running_var)
        "g1": 1.0 + 0.1 * jax.random.normal(ks[4], (out_dim,), jnp.float32),
        "beta1": jnp.linspace(-0.2, 0.2, out_dim, dtype=jnp.float32),
        "m1": jnp.linspace(-0.1, 0.1, out_dim, dtype=jnp.float32),
        "v1": jnp.linspace(0.5, 1.5, out_dim, dtype=jnp.float32),
        # BN2
        "g2": 1.0 + 0.1 * jax.random.normal(ks[5], (out_dim,), jnp.float32),
        "beta2": jnp.linspace(0.2, -0.2, out_dim, dtype=jnp.float32),
        "m2": jnp.linspace(0.1, -0.1, out_dim, dtype=jnp.float32),
        "v2": jnp.linspace(1.5, 0.5, out_dim, dtype=jnp.float32),
    }


if __name__ == "__main__":
    # Small shapes consistent with the module (NCHW input, in_dim=3 default).
    batch, in_dim, out_dim, img = 2, 3, 32, 16
    key = jax.random.PRNGKey(0)
    kx, kp = jax.random.split(key)
    x = jax.random.normal(kx, (batch, in_dim, img, img), jnp.float32)
    params = init_params(kp, in_dim, out_dim)

    out = jax.block_until_ready(jax.jit(stem_forward)(x, params))
    assert out.shape == (batch, out_dim, img // 2, img // 2), out.shape

    ref = jax.block_until_ready(stem_reference(x, params))
    err = jnp.abs(out - ref)
    max_err, mean_err = float(err.max()), float(err.mean())
    # Tolerances sized for bf16 MXU operands (f32 accumulation/epilogue);
    # structural bugs would produce O(0.3+) errors and still trip this.
    assert max_err < 8e-2 and mean_err < 2e-2, (max_err, mean_err)
    print("KERNEL_OK")
</pallas_src>

<mosaic_0001>
module attributes {stable_mosaic.version = 11 : i64} {
  func.func @_stem_fused_kernel(%arg0: i32, %arg1: memref<1x64x27xbf16, #tpu.memory_space<vmem>>, %arg2: memref<27x128xbf16, #tpu.memory_space<vmem>>, %arg3: memref<1x128xf32, #tpu.memory_space<vmem>>, %arg4: memref<9x128x128xbf16, #tpu.memory_space<vmem>>, %arg5: memref<1x128xf32, #tpu.memory_space<vmem>>, %arg6: memref<1x64x128xf32, #tpu.memory_space<vmem>>, %arg7: memref<10x24x128xf32, #tpu.memory_space<vmem>>) attributes {dimension_semantics = [#tpu.dimension_semantics<parallel>], iteration_bounds = array<i64: 2>, scalar_prefetch = 0 : i64, scratch_operands = 1 : i64, tpu.core_type = #tpu.core_type<tc>, window_params = [{transform_indices = @transform_0, window_bounds = array<i64: 1, 64, 27>}, {pipeline_mode = #tpu.pipeline_mode<synchronous>, transform_indices = @transform_1, window_bounds = array<i64: 27, 128>}, {pipeline_mode = #tpu.pipeline_mode<synchronous>, transform_indices = @transform_2, window_bounds = array<i64: 1, 128>}, {pipeline_mode = #tpu.pipeline_mode<synchronous>, transform_indices = @transform_3, window_bounds = array<i64: 9, 128, 128>}, {pipeline_mode = #tpu.pipeline_mode<synchronous>, transform_indices = @transform_4, window_bounds = array<i64: 1, 128>}, {transform_indices = @transform_5, window_bounds = array<i64: 1, 64, 128>}]} {
    %c0 = arith.constant 0 : index
    %c0_0 = arith.constant 0 : index
    %c0_1 = arith.constant 0 : index
    %0 = vector.load %arg1[%c0, %c0_0, %c0_1] : memref<1x64x27xbf16, #tpu.memory_space<vmem>>, vector<1x64x27xbf16>
    %1 = vector.shape_cast %0 : vector<1x64x27xbf16> to vector<64x27xbf16>
    %c0_2 = arith.constant 0 : index
    %c0_3 = arith.constant 0 : index
    %2 = vector.load %arg2[%c0_2, %c0_3] : memref<27x128xbf16, #tpu.memory_space<vmem>>, vector<27x128xbf16>
    %cst = arith.constant dense<0.000000e+00> : vector<64x128xf32>
    %3 = tpu.matmul %1, %2, %cst {dimension_numbers = #tpu.dot_dimension_numbers<[1], [0], [0], [1], [0, 0, 1, 1], [], []>} : vector<64x27xbf16>, vector<27x128xbf16>, vector<64x128xf32> -> vector<64x128xf32>
    %c0_4 = arith.constant 0 : index
    %c0_5 = arith.constant 0 : index
    %4 = vector.load %arg3[%c0_4, %c0_5] : memref<1x128xf32, #tpu.memory_space<vmem>>, vector<1x128xf32>
    %5 = vector.broadcast %4 : vector<1x128xf32> to vector<64x128xf32>
    %6 = arith.addf %3, %5 : vector<64x128xf32>
    %cst_6 = arith.constant 0.000000e+00 : f32
    %7 = vector.broadcast %cst_6 : f32 to vector<64x128xf32>
    %8 = arith.maximumf %6, %7 : vector<64x128xf32>
    %cst_7 = arith.constant 0.000000e+00 : f32
    %9 = vector.broadcast %cst_7 : f32 to vector<10x24x128xf32>
    %c0_8 = arith.constant 0 : index
    %c0_9 = arith.constant 0 : index
    %c0_10 = arith.constant 0 : index
    %10 = vector.load %arg7[%c0_8, %c0_9, %c0_10] : memref<10x24x128xf32, #tpu.memory_space<vmem>>, vector<10x24x128xf32>
    tpu.vector_store %arg7[%c0_8, %c0_9, %c0_10], %9 {strides = array<i32>} : memref<10x24x128xf32, #tpu.memory_space<vmem>>, vector<10x24x128xf32>,
    %11 = vector.shape_cast %8 : vector<64x128xf32> to vector<8x8x128xf32>
    %c1 = arith.constant 1 : index
    %c8 = arith.constant 8 : index
    %c0_11 = arith.constant 0 : index
    %12 = vector.load %arg7[%c1, %c8, %c0_11] : memref<10x24x128xf32, #tpu.memory_space<vmem>>, vector<8x8x128xf32>
    tpu.vector_store %arg7[%c1, %c8, %c0_11], %11 {strides = array<i32>} : memref<10x24x128xf32, #tpu.memory_space<vmem>>, vector<8x8x128xf32>,
    %cst_12 = arith.constant 0.000000e+00 : f32
    %13 = vector.broadcast %cst_12 : f32 to vector<64x128xf32>
    %c0_13 = arith.constant 0 : index
    %c7 = arith.constant 7 : index
    %c0_14 = arith.constant 0 : index
    %14 = vector.load %arg7[%c0_13, %c7, %c0_14] : memref<10x24x128xf32, #tpu.memory_space<vmem>>, vector<8x8x128xf32>
    %15 = vector.shape_cast %14 : vector<8x8x128xf32> to vector<64x128xf32>
    %16 = arith.truncf %15 : vector<64x128xf32> to vector<64x128xbf16>
    %c0_15 = arith.constant 0 : index
    %c0_16 = arith.constant 0 : index
    %c0_17 = arith.constant 0 : index
    %17 = vector.load %arg4[%c0_15, %c0_16, %c0_17] : memref<9x128x128xbf16, #tpu.memory_space<vmem>>, vector<1x128x128xbf16>
    %18 = vector.shape_cast %17 : vector<1x128x128xbf16> to vector<128x128xbf16>
    %cst_18 = arith.constant dense<0.000000e+00> : vector<64x128xf32>
    %19 = tpu.matmul %16, %18, %cst_18 {dimension_numbers = #tpu.dot_dimension_numbers<[1], [0], [0], [1], [0, 0, 1, 1], [], []>} : vector<64x128xbf16>, vector<128x128xbf16>, vector<64x128xf32> -> vector<64x128xf32>
    %20 = arith.addf %13, %19 : vector<64x128xf32>
    %c0_19 = arith.constant 0 : index
    %c8_20 = arith.constant 8 : index
    %c0_21 = arith.constant 0 : index
    %21 = vector.load %arg7[%c0_19, %c8_20, %c0_21] : memref<10x24x128xf32, #tpu.memory_space<vmem>>, vector<8x8x128xf32>
    %22 = vector.shape_cast %21 : vector<8x8x128xf32> to vector<64x128xf32>
    %23 = arith.truncf %22 : vector<64x128xf32> to vector<64x128xbf16>
    %c1_22 = arith.constant 1 : index
    %c0_23 = arith.constant 0 : index
    %c0_24 = arith.constant 0 : index
    %24 = vector.load %arg4[%c1_22, %c0_23, %c0_24] : memref<9x128x128xbf16, #tpu.memory_space<vmem>>, vector<1x128x128xbf16>
    %25 = vector.shape_cast %24 : vector<1x128x128xbf16> to vector<128x128xbf16>
    %cst_25 = arith.constant dense<0.000000e+00> : vector<64x128xf32>
    %26 = tpu.matmul %23, %25, %cst_25 {dimension_numbers = #tpu.dot_dimension_numbers<[1], [0], [0], [1], [0, 0, 1, 1], [], []>} : vector<64x128xbf16>, vector<128x128xbf16>, vector<64x128xf32> -> vector<64x128xf32>
    %27 = arith.addf %20, %26 : vector<64x128xf32>
    %c0_26 = arith.constant 0 : index
    %c9 = arith.constant 9 : index
    %c0_27 = arith.constant 0 : index
    %28 = vector.load %arg7[%c0_26, %c9, %c0_27] : memref<10x24x128xf32, #tpu.memory_space<vmem>>, vector<8x8x128xf32>
    %29 = vector.shape_cast %28 : vector<8x8x128xf32> to vector<64x128xf32>
    %30 = arith.truncf %29 : vector<64x128xf32> to vector<64x128xbf16>
    %c2 = arith.constant 2 : index
    %c0_28 = arith.constant 0 : index
    %c0_29 = arith.constant 0 : index
    %31 = vector.load %arg4[%c2, %c0_28, %c0_29] : memref<9x128x128xbf16, #tpu.memory_space<vmem>>, vector<1x128x128xbf16>
    %32 = vector.shape_cast %31 : vector<1x128x128xbf16> to vector<128x128xbf16>
    %cst_30 = arith.constant dense<0.000000e+00> : vector<64x128xf32>
    %33 = tpu.matmul %30, %32, %cst_30 {dimension_numbers = #tpu.dot_dimension_numbers<[1], [0], [0], [1], [0, 0, 1, 1], [], []>} : vector<64x128xbf16>, vector<128x128xbf16>, vector<64x128xf32> -> vector<64x128xf32>
    %34 = arith.addf %27, %33 : vector<64x128xf32>
    %c1_31 = arith.constant 1 : index
    %c7_32 = arith.constant 7 : index
    %c0_33 = arith.constant 0 : index
    %35 = vector.load %arg7[%c1_31, %c7_32, %c0_33] : memref<10x24x128xf32, #tpu.memory_space<vmem>>, vector<8x8x128xf32>
    %36 = vector.shape_cast %35 : vector<8x8x128xf32> to vector<64x128xf32>
    %37 = arith.truncf %36 : vector<64x128xf32> to vector<64x128xbf16>
    %c3 = arith.constant 3 : index
    %c0_34 = arith.constant 0 : index
    %c0_35 = arith.constant 0 : index
    %38 = vector.load %arg4[%c3, %c0_34, %c0_35] : memref<9x128x128xbf16, #tpu.memory_space<vmem>>, vector<1x128x128xbf16>
    %39 = vector.shape_cast %38 : vector<1x128x128xbf16> to vector<128x128xbf16>
    %cst_36 = arith.constant dense<0.000000e+00> : vector<64x128xf32>
    %40 = tpu.matmul %37, %39, %cst_36 {dimension_numbers = #tpu.dot_dimension_numbers<[1], [0], [0], [1], [0, 0, 1, 1], [], []>} : vector<64x128xbf16>, vector<128x128xbf16>, vector<64x128xf32> -> vector<64x128xf32>
    %41 = arith.addf %34, %40 : vector<64x128xf32>
    %c1_37 = arith.constant 1 : index
    %c8_38 = arith.constant 8 : index
    %c0_39 = arith.constant 0 : index
    %42 = vector.load %arg7[%c1_37, %c8_38, %c0_39] : memref<10x24x128xf32, #tpu.memory_space<vmem>>, vector<8x8x128xf32>
    %43 = vector.shape_cast %42 : vector<8x8x128xf32> to vector<64x128xf32>
    %44 = arith.truncf %43 : vector<64x128xf32> to vector<64x128xbf16>
    %c4 = arith.constant 4 : index
    %c0_40 = arith.constant 0 : index
    %c0_41 = arith.constant 0 : index
    %45 = vector.load %arg4[%c4, %c0_40, %c0_41] : memref<9x128x128xbf16, #tpu.memory_space<vmem>>, vector<1x128x128xbf16>
    %46 = vector.shape_cast %45 : vector<1x128x128xbf16> to vector<128x128xbf16>
    %cst_42 = arith.constant dense<0.000000e+00> : vector<64x128xf32>
    %47 = tpu.matmul %44, %46, %cst_42 {dimension_numbers = #tpu.dot_dimension_numbers<[1], [0], [0], [1], [0, 0, 1, 1], [], []>} : vector<64x128xbf16>, vector<128x128xbf16>, vector<64x128xf32> -> vector<64x128xf32>
    %48 = arith.addf %41, %47 : vector<64x128xf32>
    %c1_43 = arith.constant 1 : index
    %c9_44 = arith.constant 9 : index
    %c0_45 = arith.constant 0 : index
    %49 = vector.load %arg7[%c1_43, %c9_44, %c0_45] : memref<10x24x128xf32, #tpu.memory_space<vmem>>, vector<8x8x128xf32>
    %50 = vector.shape_cast %49 : vector<8x8x128xf32> to vector<64x128xf32>
    %51 = arith.truncf %50 : vector<64x128xf32> to vector<64x128xbf16>
    %c5 = arith.constant 5 : index
    %c0_46 = arith.constant 0 : index
    %c0_47 = arith.constant 0 : index
    %52 = vector.load %arg4[%c5, %c0_46, %c0_47] : memref<9x128x128xbf16, #tpu.memory_space<vmem>>, vector<1x128x128xbf16>
    %53 = vector.shape_cast %52 : vector<1x128x128xbf16> to vector<128x128xbf16>
    %cst_48 = arith.constant dense<0.000000e+00> : vector<64x128xf32>
    %54 = tpu.matmul %51, %53, %cst_48 {dimension_numbers = #tpu.dot_dimension_numbers<[1], [0], [0], [1], [0, 0, 1, 1], [], []>} : vector<64x128xbf16>, vector<128x128xbf16>, vector<64x128xf32> -> vector<64x128xf32>
    %55 = arith.addf %48, %54 : vector<64x128xf32>
    %c2_49 = arith.constant 2 : index
    %c7_50 = arith.constant 7 : index
    %c0_51 = arith.constant 0 : index
    %56 = vector.load %arg7[%c2_49, %c7_50, %c0_51] : memref<10x24x128xf32, #tpu.memory_space<vmem>>, vector<8x8x128xf32>
    %57 = vector.shape_cast %56 : vector<8x8x128xf32> to vector<64x128xf32>
    %58 = arith.truncf %57 : vector<64x128xf32> to vector<64x128xbf16>
    %c6 = arith.constant 6 : index
    %c0_52 = arith.constant 0 : index
    %c0_53 = arith.constant 0 : index
    %59 = vector.load %arg4[%c6, %c0_52, %c0_53] : memref<9x128x128xbf16, #tpu.memory_space<vmem>>, vector<1x128x128xbf16>
    %60 = vector.shape_cast %59 : vector<1x128x128xbf16> to vector<128x128xbf16>
    %cst_54 = arith.constant dense<0.000000e+00> : vector<64x128xf32>
    %61 = tpu.matmul %58, %60, %cst_54 {dimension_numbers = #tpu.dot_dimension_numbers<[1], [0], [0], [1], [0, 0, 1, 1], [], []>} : vector<64x128xbf16>, vector<128x128xbf16>, vector<64x128xf32> -> vector<64x128xf32>
    %62 = arith.addf %55, %61 : vector<64x128xf32>
    %c2_55 = arith.constant 2 : index
    %c8_56 = arith.constant 8 : index
    %c0_57 = arith.constant 0 : index
    %63 = vector.load %arg7[%c2_55, %c8_56, %c0_57] : memref<10x24x128xf32, #tpu.memory_space<vmem>>, vector<8x8x128xf32>
    %64 = vector.shape_cast %63 : vector<8x8x128xf32> to vector<64x128xf32>
    %65 = arith.truncf %64 : vector<64x128xf32> to vector<64x128xbf16>
    %c7_58 = arith.constant 7 : index
    %c0_59 = arith.constant 0 : index
    %c0_60 = arith.constant 0 : index
    %66 = vector.load %arg4[%c7_58, %c0_59, %c0_60] : memref<9x128x128xbf16, #tpu.memory_space<vmem>>, vector<1x128x128xbf16>
    %67 = vector.shape_cast %66 : vector<1x128x128xbf16> to vector<128x128xbf16>
    %cst_61 = arith.constant dense<0.000000e+00> : vector<64x128xf32>
    %68 = tpu.matmul %65, %67, %cst_61 {dimension_numbers = #tpu.dot_dimension_numbers<[1], [0], [0], [1], [0, 0, 1, 1], [], []>} : vector<64x128xbf16>, vector<128x128xbf16>, vector<64x128xf32> -> vector<64x128xf32>
    %69 = arith.addf %62, %68 : vector<64x128xf32>
    %c2_62 = arith.constant 2 : index
    %c9_63 = arith.constant 9 : index
    %c0_64 = arith.constant 0 : index
    %70 = vector.load %arg7[%c2_62, %c9_63, %c0_64] : memref<10x24x128xf32, #tpu.memory_space<vmem>>, vector<8x8x128xf32>
    %71 = vector.shape_cast %70 : vector<8x8x128xf32> to vector<64x128xf32>
    %72 = arith.truncf %71 : vector<64x128xf32> to vector<64x128xbf16>
    %c8_65 = arith.constant 8 : index
    %c0_66 = arith.constant 0 : index
    %c0_67 = arith.constant 0 : index
    %73 = vector.load %arg4[%c8_65, %c0_66, %c0_67] : memref<9x128x128xbf16, #tpu.memory_space<vmem>>, vector<1x128x128xbf16>
    %74 = vector.shape_cast %73 : vector<1x128x128xbf16> to vector<128x128xbf16>
    %cst_68 = arith.constant dense<0.000000e+00> : vector<64x128xf32>
    %75 = tpu.matmul %72, %74, %cst_68 {dimension_numbers = #tpu.dot_dimension_numbers<[1], [0], [0], [1], [0, 0, 1, 1], [], []>} : vector<64x128xbf16>, vector<128x128xbf16>, vector<64x128xf32> -> vector<64x128xf32>
    %76 = arith.addf %69, %75 : vector<64x128xf32>
    %c0_69 = arith.constant 0 : index
    %c0_70 = arith.constant 0 : index
    %77 = vector.load %arg5[%c0_69, %c0_70] : memref<1x128xf32, #tpu.memory_space<vmem>>, vector<1x128xf32>
    %78 = vector.broadcast %77 : vector<1x128xf32> to vector<64x128xf32>
    %79 = arith.addf %76, %78 : vector<64x128xf32>
    %c0_71 = arith.constant 0 : index
    %c0_72 = arith.constant 0 : index
    %c0_73 = arith.constant 0 : index
    %80 = vector.load %arg6[%c0_71, %c0_72, %c0_73] : memref<1x64x128xf32, #tpu.memory_space<vmem>>, vector<1x64x128xf32>
    %81 = vector.shape_cast %80 : vector<1x64x128xf32> to vector<64x128xf32>
    %82 = vector.shape_cast %79 : vector<64x128xf32> to vector<1x64x128xf32>
    tpu.vector_store %arg6[%c0_71, %c0_72, %c0_73], %82 {strides = array<i32>} : memref<1x64x128xf32, #tpu.memory_space<vmem>>, vector<1x64x128xf32>,
    return
  }
  func.func @transform_0(%arg0: i32) -> (i32, i32, i32) {
    %c0_i32 = arith.constant 0 : i32
    %c0_i32_0 = arith.constant 0 : i32
    %c0_i32_1 = arith.constant 0 : i32
    return %arg0, %c0_i32, %c0_i32_0 : i32, i32, i32
  }
  func.func @transform_1(%arg0: i32) -> (i32, i32) {
    %c0_i32 = arith.constant 0 : i32
    %c0_i32_0 = arith.constant 0 : i32
    %c0_i32_1 = arith.constant 0 : i32
    return %c0_i32, %c0_i32_0 : i32, i32
  }
  func.func @transform_2(%arg0: i32) -> (i32, i32) {
    %c0_i32 = arith.constant 0 : i32
    %c0_i32_0 = arith.constant 0 : i32
    %c0_i32_1 = arith.constant 0 : i32
    return %c0_i32, %c0_i32_0 : i32, i32
  }
  func.func @transform_3(%arg0: i32) -> (i32, i32, i32) {
    %c0_i32 = arith.constant 0 : i32
    %c0_i32_0 = arith.constant 0 : i32
    %c0_i32_1 = arith.constant 0 : i32
    %c0_i32_2 = arith.constant 0 : i32
    return %c0_i32, %c0_i32_0, %c0_i32_1 : i32, i32, i32
  }
  func.func @transform_4(%arg0: i32) -> (i32, i32) {
    %c0_i32 = arith.constant 0 : i32
    %c0_i32_0 = arith.constant 0 : i32
    %c0_i32_1 = arith.constant 0 : i32
    return %c0_i32, %c0_i32_0 : i32, i32
  }
  func.func @transform_5(%arg0: i32) -> (i32, i32, i32) {
    %c0_i32 = arith.constant 0 : i32
    %c0_i32_0 = arith.constant 0 : i32
    %c0_i32_1 = arith.constant 0 : i32
    return %arg0, %c0_i32, %c0_i32_0 : i32, i32, i32
  }
}

</mosaic_0001>

<bundles_post_ra>
// kernel: stem_forward.1
= control target key start
LH: loop header
LB: loop body
LE: loop exit
PB: predicated region body
PF: predicated region fallthrough
CT: control target
= control target key end

     0   :  { %s2579_s18 = smov 0   ;;  %s2949_s0 = inlined_call_operand.vmem [shape: bf16[2,64,27], index: 0, kind: input, shape index: {}]   ;;  %s2950_s1 = inlined_call_operand.vmem [shape: bf16[27,128], index: 1, kind: input, shape index: {}]   ;;  %s2951_s2 = inlined_call_operand.vmem [shape: f32[1,128], index: 2, kind: input, shape index: {}]   ;;  %s2952_s3 = inlined_call_operand.vmem [shape: bf16[9,128,128], index: 3, kind: input, shape index: {}]   ;;  %s2953_s4 = inlined_call_operand.vmem [shape: f32[1,128], index: 4, kind: input, shape index: {}]   ;;  %s2954_s5 = inlined_call_operand.vmem [shape: f32[2,64,128], index: 5, kind: output, shape index: {}]  }
   0x1 LB: > { %s1820_s19 = sadd.s32 4294967295, %s2545_s18   ;;  %p1824_p0 = scmp.ge.s32.totalorder %s2545_s18, 1  ;;  %s2545_s18 = sphi %s2579_s18, %s15_s18  }
   0x2   : > { %p187_p1 = scmp.lt.s32.totalorder %s2545_s18, 3 }
   0x4   : > { %p188_p2 = pnand %p1824_p0, %p187_p1 }
   0x5   : > { %v2461_v0 = vld [vmem:[%s2950_s1] sm:$0xff] (!%p188_p2)   ;;  %vm289_vm0 = vcmask (!%p188_p2), 1044480   ;;  %v2462_v1 = vld [vmem:[%s2950_s1 + $0x8] sm:$0x3f] (!%p188_p2)   ;;  %vm290_vm1 = vcmask (!%p188_p2), 1045504   ;;  %p215_p3 = scmp.lt.s32.totalorder (!%p188_p2), %s1820_s19, 1 }
   0x6   : > { %191 = sbr.rel (%p188_p2) target bundleno = 597 (0x255), region = 40  ;;  %2159 = vmatprep.subr.bf16.mxu0 (!%p188_p2), %v2461_v0  ;;  %v2547_v2 = vmov (!%p188_p2), 65535   ;;  %v2467_v5 = vld [vmem:[%s2952_s3 + $0x40] sm:$0xff] (!%p188_p2)   ;;  %v2470_v8 = vld [vmem:[%s2952_s3 + $0x108] sm:$0xff] (!%p188_p2)   ;;  %vm276_vm2 = vcmask (!%p188_p2), 220160   ;;  %v2471_v13 = vld [vmem:[%s2952_s3 + $0x50] sm:$0xff] (!%p188_p2)  }
   0x7   : > { %2160 = vmatpush3.bf16.msra.mxu0 (!%p188_p2), %v2461_v0  ;;  %v291_v3 = vsel (!%p188_p2), %vm289_vm0, 4294967295, %v2547_v2  ;;  %v2468_v6 = vld [vmem:[%s2952_s3 + $0x100] sm:$0xff] (!%p188_p2)   ;;  %v2469_v9 = vld [vmem:[%s2952_s3 + $0x48] sm:$0xff] (!%p188_p2)   ;;  %v2472_v14 = vld [vmem:[%s2952_s3 + $0x110] sm:$0xff] (!%p188_p2)   ;;  %v2548_v25 = vmov (!%p188_p2), 0.0  }
   0x8   : > { %v292_v4 = vsel (!%p188_p2), %vm290_vm1, %v291_v3, 0  ;;  %2267 = vmatprep.subr.bf16.mxu1 (!%p188_p2), %v2468_v6  ;;  %v2474_v16 = vld [vmem:[%s2952_s3 + $0x118] sm:$0xff] (!%p188_p2)   ;;  %v2475_v18 = vld [vmem:[%s2952_s3 + $0x60] sm:$0xff] (!%p188_p2)   ;;  %v2477_v20 = vld [vmem:[%s2952_s3 + $0x68] sm:$0xff] (!%p188_p2)   ;;  %369 = vst [vmem:[#allocation2] sm:$0xff] (!%p188_p2), %v2548_v25 }
   0x9   : > { %v294_v7 = vand.u32 (!%p188_p2), %v2462_v1, %v292_v4  ;;  %2268 = vmatpush3.bf16.msra.mxu1 (!%p188_p2), %v2468_v6  ;;  %v2473_v17 = vld [vmem:[%s2952_s3 + $0x58] sm:$0xff] (!%p188_p2)   ;;  %v2476_v19 = vld [vmem:[%s2952_s3 + $0x120] sm:$0xff] (!%p188_p2)   ;;  %v2478_v21 = vld [vmem:[%s2952_s3 + $0x128] sm:$0xff] (!%p188_p2)   ;;  %370 = vst [vmem:[#allocation2 + $0x8] sm:$0xff] (!%p188_p2), %v2548_v25 }
   0xa   : > { %2269 = vmatprep.subr.bf16.mxu1 (!%p188_p2), %v2470_v8  ;;  %v2479_v22 = vld [vmem:[%s2952_s3 + $0x70] sm:$0xff] (!%p188_p2)   ;;  %v2481_v24 = vld [vmem:[%s2952_s3 + $0x78] sm:$0xff] (!%p188_p2)   ;;  %371 = vst [vmem:[#allocation2 + $0x10] sm:$0xff] (!%p188_p2), %v2548_v25  ;;  %372 = vst [vmem:[#allocation2 + $0x18] sm:$0xff] (!%p188_p2), %v2548_v25 }
   0xb   : > { %2161 = vmatprep.subr.bf16.mxu0 (!%p188_p2), %v294_v7  ;;  %v2480_v23 = vld [vmem:[%s2952_s3 + $0x130] sm:$0xff] (!%p188_p2)   ;;  %374 = vst [vmem:[#allocation2 + $0x28] sm:$0xff] (!%p188_p2), %v2548_v25  ;;  %375 = vst [vmem:[#allocation2 + $0x30] sm:$0xff] (!%p188_p2), %v2548_v25  ;;  %v2482_v26 = vld [vmem:[%s2952_s3 + $0x138] sm:$0xff] (!%p188_p2)  }
   0xc   : > { %2162 = vmatpush3.bf16.msra.mxu0 (!%p188_p2), %v294_v7  ;;  %377 = vst [vmem:[#allocation2 + $0x40] sm:$0xff] (!%p188_p2), %v2548_v25  ;;  %378 = vst [vmem:[#allocation2 + $0x48] sm:$0xff] (!%p188_p2), %v2548_v25  ;;  %v2483_v27 = vld [vmem:[%s2952_s3] sm:$0xff] (!%p188_p2)   ;;  %v2485_v47 = vld [vmem:[%s2952_s3 + $0x8] sm:$0xff] (!%p188_p2)  }
   0xd   : > { %s2956_s19 = smov (!%p215_p3, %s1820_s19), 1  ;;  %2171 = vmatprep.subr.bf16.mxu0 %v2467_v5  ;;  %2270 = vmatpush3.bf16.msra.mxu1 %v2470_v8  ;;  %380 = vst [vmem:[#allocation2 + $0x58] sm:$0xff] %v2548_v25  ;;  %381 = vst [vmem:[#allocation2 + $0x60] sm:$0xff] %v2548_v25  ;;  %v2484_v28 = vld [vmem:[%s2952_s3 + $0x140] sm:$0xff]   ;;  %v2486_v50 = vld [vmem:[%s2952_s3 + $0x148] sm:$0xff]  }
   0xe   : > { %s2043_s28 = sshll.u32 %s2956_s19, 5  ;;  %2271 = vmatprep.subr.bf16.mxu1 %v2472_v14  ;;  %383 = vst [vmem:[#allocation2 + $0x70] sm:$0xff] %v2548_v25  ;;  %384 = vst [vmem:[#allocation2 + $0x78] sm:$0xff] %v2548_v25  ;;  %v1829_v29 = vld [vmem:[%s2951_s2] ss:$0 sm:$0xff]  ;;  %v2487_v59 = vld [vmem:[%s2952_s3 + $0x10] sm:$0xff]  }
   0xf   : > { %s219_s8 = scalar_lea.vmem %s2949_s0, %s2043_s28  ;;  %386 = vst [vmem:[#allocation2 + $0x88] sm:$0xff] %v2548_v25  ;;  %387 = vst [vmem:[#allocation2 + $0x90] sm:$0xff] %v2548_v25  ;;  %v2488_v60 = vld [vmem:[%s2952_s3 + $0x150] sm:$0xff]   ;;  %v2490_v8 = vld [vmem:[%s2952_s3 + $0x158] sm:$0xff]   ;;  %s2044_s11 = sshll.u32 %s2956_s19, 6 }
  0x10   : > { %v2463_v10 = vld [vmem:[%s219_s8] sm:$0xff]   ;;  %v2464_v11 = vld [vmem:[%s219_s8 + $0x8] sm:$0xff]   ;;  %v2465_v12 = vld [vmem:[%s219_s8 + $0x10] sm:$0xff]   ;;  %389 = vst [vmem:[#allocation2 + $0xa0] sm:$0xff] %v2548_v25  ;;  %s224_s16 = scalar_lea.vmem %s2954_s5, %s2044_s11 }
  0x11   : > { %2163 = vmatprep.mubr.msk.bf16.mxu0 %vm276_vm2, %v2463_v10  ;;  %v2466_v15 = vld [vmem:[%s219_s8 + $0x18] sm:$0xff]   ;;  %2272 = vmatpush3.bf16.msra.mxu1 %v2472_v14  ;;  %390 = vst [vmem:[#allocation2 + $0xa8] sm:$0xff] %v2548_v25  ;;  %392 = vst [vmem:[#allocation2 + $0xb8] sm:$0xff] %v2548_v25  ;;  %v408_v63 = vld [vmem:[#allocation2 + $0x7] sm:$0xff] }
  0x12   : > { %2164 = vmatmul.mubr.msk.bf16.vlgmr.msra.gmra.mrb[0].mxu0 %vm276_vm2, %v2464_v11  ;;  %2273 = vmatprep.subr.bf16.mxu1 %v2474_v16  ;;  %393 = vst [vmem:[#allocation2 + $0xc0] sm:$0xff] %v2548_v25  ;;  %395 = vst [vmem:[#allocation2 + $0xd0] sm:$0xff] %v2548_v25  ;;  %v2491_v10 = vld [vmem:[%s2952_s3 + $0x20] sm:$0xff]   ;;  %v2495_v14 = vld [vmem:[%s2952_s3 + $0x30] sm:$0xff]  }
  0x13   : > { %2167 = vmatprep.mubr.msk.bf16.mxu0 %vm276_vm2, %v2465_v12  ;;  %2172 = vmatpush3.bf16.msra.mxu0 %v2467_v5  ;;  %396 = vst [vmem:[#allocation2 + $0xd8] sm:$0xff] %v2548_v25  ;;  %397 = vst [vmem:[#allocation2 + $0xe0] sm:$0xff] %v2548_v25  ;;  %v2489_v5 = vld [vmem:[%s2952_s3 + $0x18] sm:$0xff]   ;;  %v2492_v11 = vld [vmem:[%s2952_s3 + $0x160] sm:$0xff]  }
  0x14   : > { %2173 = vmatprep.subr.bf16.mxu0 %v2469_v9  ;;  %398 = vst [vmem:[#allocation2 + $0xe8] sm:$0xff] %v2548_v25  ;;  %v2493_v12 = vld [vmem:[%s2952_s3 + $0x28] sm:$0xff]  }
  0x15   : > { %2274 = vmatpush3.bf16.msra.mxu1 %v2474_v16  ;;  %v2497_v16 = vld [vmem:[%s2952_s3 + $0x38] sm:$0xff]  }
  0x16   : > { %2275 = vmatprep.subr.bf16.mxu1 %v2476_v19 }
  0x17   : > { %2174 = vmatpush3.bf16.msra.mxu0 %v2469_v9 }
  0x18   : > { %2175 = vmatprep.subr.bf16.mxu0 %v2471_v13 }
  0x19   : > { %2276 = vmatpush3.bf16.msra.mxu1 %v2476_v19 }
  0x1a   : > { %2168 = vmatmul.mubr.msk.bf16.gmra.mrb[4].mxu0 %vm276_vm2, %v2466_v15  ;;  %2277 = vmatprep.subr.bf16.mxu1 %v2478_v21  ;;  %v2496_v15 = vld [vmem:[%s2952_s3 + $0x170] sm:$0xff]  }
  0x1b   : > { %2176 = vmatpush3.bf16.msra.mxu0 %v2471_v13  ;;  %v2494_v13 = vld [vmem:[%s2952_s3 + $0x168] sm:$0xff]  }
  0x1c   : > { %2177 = vmatprep.subr.bf16.mxu0 %v2473_v17 }
  0x1d   : > { %2278 = vmatpush3.bf16.msra.mxu1 %v2478_v21  ;;  %v2500_v21 = vld [vmem:[%s2952_s3 + $0x180] sm:$0xff]  }
  0x1e   : > { %2279 = vmatprep.subr.bf16.mxu1 %v2480_v23 }
  0x1f   : > { %2178 = vmatpush3.bf16.msra.mxu0 %v2473_v17  ;;  %v2498_v17 = vld [vmem:[%s2952_s3 + $0x178] sm:$0xff]  }
  0x20   : > { %2179 = vmatprep.subr.bf16.mxu0 %v2475_v18 }
  0x21   : > { %2280 = vmatpush3.bf16.msra.mxu1 %v2480_v23 }
  0x22   : > { %2281 = vmatprep.subr.bf16.mxu1 %v2482_v26 }
  0x23   : > { %2180 = vmatpush3.bf16.msra.mxu0 %v2475_v18  ;;  %v2499_v18 = vld [vmem:[%s2952_s3 + $0x80] sm:$0xff]  }
  0x24   : > { %2181 = vmatprep.subr.bf16.mxu0 %v2477_v20 }
  0x25   : > { %2282 = vmatpush3.bf16.msra.mxu1 %v2482_v26 }
  0x26   : > { %2291 = vmatprep.subr.bf16.mxu1 %v2484_v28 }
  0x27   : > { %2182 = vmatpush3.bf16.msra.mxu0 %v2477_v20 }
  0x28   : > { %2183 = vmatprep.subr.bf16.mxu0 %v2479_v22 }
  0x2b   : > { %2184 = vmatpush3.bf16.msra.mxu0 %v2479_v22 }
  0x2c   : > { %2185 = vmatprep.subr.bf16.mxu0 %v2481_v24 }
  0x2f   : > { %2186 = vmatpush3.bf16.msra.mxu0 %v2481_v24 }
  0x30   : > { %2195 = vmatprep.subr.bf16.mxu0 %v2483_v27 }
  0xe5   : > { %v2165_v30 = vpop.f32.mrb[0].mxu0 }
  0xe6   : > { %v339_v31 = vadd.f32 %v2165_v30, %v1829_v29  ;;  %v330_v32 = vpop.f32.mrb[1].mxu0 }
  0xe7   : > { %v331_v33 = vadd.f32 %v1829_v29, %v330_v32  ;;  %v2166_v34 = vpop.f32.mrb[2].mxu0 }
  0xe8   : > { %v363_v35 = vmax.f32 %v339_v31, 0.0  ;;  %v342_v36 = vadd.f32 %v2166_v34, %v1829_v29  ;;  %v333_v37 = vpop.f32.mrb[3].mxu0 }
  0xe9   : > { %v361_v38 = vmax.f32 %v331_v33, 0.0  ;;  %v334_v39 = vadd.f32 %v1829_v29, %v333_v37  ;;  %v2502_v33 = vld [vmem:[%s2952_s3 + $0x188] sm:$0xff]  }
  0xea   : > { %402 = vst [vmem:[#allocation2 + $0x50] sm:$0xff] %v363_v35  ;;  %v364_v40 = vmax.f32 %v342_v36, 0.0 }
  0xeb   : > { %400 = vst [vmem:[#allocation2 + $0x20] sm:$0xff] %v361_v38  ;;  %v362_v41 = vmax.f32 %v334_v39, 0.0  ;;  %v444_v42 = vpack.c.bf16 %v361_v38, %v2548_v25  ;;  %v2504_v39 = vld [vmem:[%s2952_s3 + $0x190] sm:$0xff]  }
  0xec   : > { %403 = vst [vmem:[#allocation2 + $0x68] sm:$0xff] %v364_v40  ;;  %v1000_v43 = vpack.c.bf16 %v364_v40, %v363_v35 }
  0xed   : > { %401 = vst [vmem:[#allocation2 + $0x38] sm:$0xff] %v362_v41  ;;  %v2169_v44 = vpop.f32.mrb[4].mxu0  ;;  %2187 = vmatprep.mubr.bf16.mxu0 %v444_v42  ;;  %v2683_v45 = vpack.c.bf16 %v363_v35, %v362_v41  ;;  %v999_v46 = vpack.c.bf16 %v362_v41, %v361_v38  ;;  %v2503_v35 = vld [vmem:[%s2952_s3 + $0x90] sm:$0xff]  }
  0xee   : > { %v355_v48 = vadd.f32 %v2169_v44, %v1829_v29  ;;  %v346_v49 = vpop.f32.mrb[5].mxu0  ;;  %v691_v38 = vld [vmem:[#allocation2 + $0x9] sm:$0xff] }
  0xef   : > { %v347_v51 = vadd.f32 %v1829_v29, %v346_v49  ;;  %v2170_v52 = vpop.f32.mrb[6].mxu0  ;;  %2188 = vmatmul.mubr.bf16.vlgmr.msra.gmra.mrb[8].mxu0 %v2683_v45  ;;  %2283 = vmatprep.mubr.bf16.mxu1 %v999_v46  ;;  %v2508_v49 = vld [vmem:[%s2952_s3 + $0x1a0] sm:$0xff]  }
  0xf0   : > { %v367_v53 = vmax.f32 %v355_v48, 0.0  ;;  %v358_v54 = vadd.f32 %v2170_v52, %v1829_v29  ;;  %v349_v55 = vpop.f32.mrb[7].mxu0  ;;  %2196 = vmatpush3.bf16.msra.mxu0 %v2483_v27  ;;  %2284 = vmatmul.mubr.bf16.vlgmr.msra.gmra.mrb[0].mxu1 %v1000_v43  ;;  %v2505_v43 = vld [vmem:[%s2952_s3 + $0x98] sm:$0xff]   ;;  %v2507_v48 = vld [vmem:[%s2952_s3 + $0xa0] sm:$0xff]   ;;  %v2511_v52 = vld [vmem:[%s2952_s3 + $0xb0] sm:$0xff]  }
  0xf1   : > { %v365_v56 = vmax.f32 %v347_v51, 0.0  ;;  %v350_v57 = vadd.f32 %v1829_v29, %v349_v55  ;;  %2292 = vmatpush3.bf16.msra.mxu1 %v2484_v28  ;;  %2197 = vmatprep.subr.bf16.mxu0 %v2485_v47  ;;  %v2757_v22 = vld [vmem:[#allocation2 + $0x4f] sm:$0xff]  ;;  %v2514_v55 = vld [vmem:[%s2952_s3 + $0x1b8] sm:$0xff]  }
  0xf2   : > { %406 = vst [vmem:[#allocation2 + $0xb0] sm:$0xff] %v367_v53  ;;  %v2692_v58 = vmax.f32 %v358_v54, 0.0  ;;  %2293 = vmatprep.subr.bf16.mxu1 %v2486_v50  ;;  %v2702_v0 = vld [vmem:[#allocation2 + $0x1f] sm:$0xff]  ;;  %v2501_v28 = vld [vmem:[%s2952_s3 + $0x88] sm:$0xff]   ;;  %v2774_v30 = vld [vmem:[#allocation2 + $0x51] sm:$0xff] }
  0xf3   : > { %404 = vst [vmem:[#allocation2 + $0x80] sm:$0xff] %v365_v56  ;;  %v366_v61 = vmax.f32 %v350_v57, 0.0  ;;  %v2700_v62 = vpack.c.bf16 %v365_v56, %v364_v40  ;;  %v416_v6 = vpack.c.bf16 %v2702_v0, %v408_v63  ;;  %v2716_v7 = vld [vmem:[#allocation2 + $0x21] sm:$0xff]  ;;  %v2759_v23 = vld [vmem:[#allocation2 + $0x69] sm:$0xff]  ;;  %v2513_v54 = vld [vmem:[%s2952_s3 + $0xb8] sm:$0xff]  }
  0xf4   : > { %407 = vst [vmem:[#allocation2 + $0xc8] sm:$0xff] %v2692_v58  ;;  %2198 = vmatpush3.bf16.msra.mxu0 %v2485_v47  ;;  %v1002_v1 = vpack.c.bf16 %v2692_v58, %v367_v53  ;;  %v2709_v4 = vld [vmem:[#allocation2 + $0x39] sm:$0xff]  ;;  %v2763_v26 = vld [vmem:[#allocation2 + $0x67] sm:$0xff]  ;;  %v1150_v31 = vpack.c.bf16 %v2759_v23, %v2774_v30  ;;  %v699_v44 = vpack.c.bf16 %v2716_v7, %v691_v38 }
  0xf5   : > { %405 = vst [vmem:[#allocation2 + $0x98] sm:$0xff] %v366_v61  ;;  %2294 = vmatpush3.bf16.msra.mxu1 %v2486_v50  ;;  %2191 = vmatprep.mubr.bf16.mxu0 %v2700_v62  ;;  %v2707_v2 = vpack.c.bf16 %v367_v53, %v366_v61  ;;  %v1001_v3 = vpack.c.bf16 %v366_v61, %v365_v56  ;;  %v2750_v19 = vld [vmem:[#allocation2 + $0x37] sm:$0xff]  ;;  %v2509_v50 = vld [vmem:[%s2952_s3 + $0xa8] sm:$0xff]   ;;  %v2515_v56 = vld [vmem:[%s2952_s3 + $0xc0] sm:$0xff]  }
  0xf6   : > { %2199 = vmatprep.subr.bf16.mxu0 %v2487_v59  ;;  %2295 = vmatprep.subr.bf16.mxu1 %v2488_v60  ;;  %v1149_v9 = vpack.c.bf16 %v2709_v4, %v2716_v7  ;;  %v417_v24 = vpack.c.bf16 %v2757_v22, %v2750_v19  ;;  %v2506_v47 = vld [vmem:[%s2952_s3 + $0x198] sm:$0xff]   ;;  %v2510_v51 = vld [vmem:[%s2952_s3 + $0x1a8] sm:$0xff]   ;;  %v2512_v53 = vld [vmem:[%s2952_s3 + $0x1b0] sm:$0xff]  }
  0xf7   : > { %2192 = vmatmul.mubr.bf16.gmra.mrb[12].mxu0 %v2707_v2  ;;  %2287 = vmatprep.mubr.bf16.mxu1 %v1001_v3  ;;  %v2516_v57 = vld [vmem:[%s2952_s3 + $0x1c0] sm:$0xff]   ;;  %v2518_v63 = vld [vmem:[%s2952_s3 + $0x1c8] sm:$0xff]   ;;  %v2520_v3 = vld [vmem:[%s2952_s3 + $0x1d0] sm:$0xff]  }
  0xf8   : > { %2200 = vmatpush3.bf16.msra.mxu0 %v2487_v59  ;;  %2211 = vmatprep.mubr.bf16.mxu0 %v416_v6  ;;  %v2843_v59 = vpack.c.bf16 %v2774_v30, %v2709_v4  ;;  %v2521_v7 = vld [vmem:[%s2952_s3 + $0xd8] sm:$0xff]  }
  0xf9   : > { %2288 = vmatmul.mubr.bf16.gmra.mrb[4].mxu1 %v1002_v1  ;;  %2201 = vmatprep.subr.bf16.mxu0 %v2489_v5  ;;  %v2791_v37 = vld [vmem:[#allocation2 + $0xaf] sm:$0xff] }
  0xfa   : > { %2296 = vmatpush3.bf16.msra.mxu1 %v2488_v60  ;;  %2307 = vmatprep.mubr.bf16.mxu1 %v1149_v9  ;;  %v2752_v20 = vld [vmem:[#allocation2 + $0x7f] sm:$0xff]  ;;  %v2796_v40 = vld [vmem:[#allocation2 + $0xb1] sm:$0xff]  ;;  %v2517_v60 = vld [vmem:[%s2952_s3 + $0xc8] sm:$0xff]  }
  0xfb   : > { %2297 = vmatprep.subr.bf16.mxu1 %v2490_v8  ;;  %v2772_v29 = vpack.c.bf16 %v2752_v20, %v2763_v26  ;;  %v2778_v32 = vld [vmem:[#allocation2 + $0x81] sm:$0xff]  ;;  %v2798_v41 = vld [vmem:[#allocation2 + $0xc9] sm:$0xff] }
  0xfc   : > { %2202 = vmatpush3.bf16.msra.mxu0 %v2489_v5  ;;  %v2765_v27 = vld [vmem:[#allocation2 + $0x99] sm:$0xff]  ;;  %v1152_v46 = vpack.c.bf16 %v2798_v41, %v2796_v40  ;;  %v2850_v61 = vpack.c.bf16 %v2778_v32, %v2759_v23  ;;  %v2519_v1 = vld [vmem:[%s2952_s3 + $0xd0] sm:$0xff]   ;;  %v1298_v4 = vld [vmem:[#allocation2 + $0xc7] sm:$0xff] }
  0xfd   : > { %2203 = vmatprep.subr.bf16.mxu0 %v2491_v10  ;;  %v1151_v34 = vpack.c.bf16 %v2765_v27, %v2778_v32  ;;  %v2789_v36 = vld [vmem:[#allocation2 + $0x97] sm:$0xff]  ;;  %v1299_v5 = vld [vmem:[#allocation2 + $0xdf] sm:$0xff]  ;;  %v2866_v6 = vpack.c.bf16 %v2796_v40, %v2765_v27  ;;  %v852_v23 = vpack.c.bf16 %v1298_v4, %v2791_v37 }
  0xfe   : > { %2298 = vmatpush3.bf16.msra.mxu1 %v2490_v8  ;;  %v419_v42 = vpack.c.bf16 %v2791_v37, %v2789_v36  ;;  %v849_v8 = vpack.c.bf16 %v2750_v19, %v2702_v0  ;;  %v1303_v9 = vpack.c.bf16 %v1299_v5, %v1298_v4  ;;  %v2524_v0 = vld [vmem:[%s2952_s3 + $0x1e0] sm:$0xff]   ;;  %v851_v19 = vpack.c.bf16 %v2789_v36, %v2752_v20 }
  0xff   : > { %2299 = vmatprep.subr.bf16.mxu1 %v2492_v11  ;;  %v1453_v20 = vpack.c.bf16 %v2548_v25, %v2692_v58  ;;  %v2536_v25 = vld [vmem:[%s2952_s3 + $0x228] sm:$0xff]   ;;  %v2537_v58 = vld [vmem:[%s2952_s3 + $0x230] sm:$0xff]   ;;  %v2040_v37 = vld [vmem:[%s2953_s4] ss:$0 sm:$0xff] }
 0x100   : > { %2204 = vmatpush3.bf16.msra.mxu0 %v2491_v10  ;;  %v2522_v10 = vld [vmem:[%s2952_s3 + $0x1d8] sm:$0xff]  }
 0x101   : > { %2205 = vmatprep.subr.bf16.mxu0 %v2493_v12 }
 0x102   : > { %2300 = vmatpush3.bf16.msra.mxu1 %v2492_v11  ;;  %v2523_v11 = vld [vmem:[%s2952_s3 + $0xe0] sm:$0xff]  }
 0x103   : > { %2301 = vmatprep.subr.bf16.mxu1 %v2494_v13 }
 0x104   : > { %2206 = vmatpush3.bf16.msra.mxu0 %v2493_v12  ;;  %v2525_v12 = vld [vmem:[%s2952_s3 + $0xe8] sm:$0xff]  }
 0x105   : > { %2207 = vmatprep.subr.bf16.mxu0 %v2495_v14 }
 0x106   : > { %2302 = vmatpush3.bf16.msra.mxu1 %v2494_v13  ;;  %v2526_v13 = vld [vmem:[%s2952_s3 + $0x1e8] sm:$0xff]  }
 0x107   : > { %2303 = vmatprep.subr.bf16.mxu1 %v2496_v15 }
 0x108   : > { %2208 = vmatpush3.bf16.msra.mxu0 %v2495_v14  ;;  %v2528_v14 = vld [vmem:[%s2952_s3 + $0x1f0] sm:$0xff]  }
 0x109   : > { %2209 = vmatprep.subr.bf16.mxu0 %v2497_v16 }
 0x10a   : > { %2304 = vmatpush3.bf16.msra.mxu1 %v2496_v15  ;;  %v2529_v15 = vld [vmem:[%s2952_s3 + $0xf8] sm:$0xff]  }
 0x10b   : > { %2305 = vmatprep.subr.bf16.mxu1 %v2498_v17 }
 0x10c   : > { %2210 = vmatpush3.bf16.msra.mxu0 %v2497_v16  ;;  %v2530_v16 = vld [vmem:[%s2952_s3 + $0x1f8] sm:$0xff]  }
 0x10d   : > { %2219 = vmatprep.subr.bf16.mxu0 %v2499_v18 }
 0x10e   : > { %2306 = vmatpush3.bf16.msra.mxu1 %v2498_v17  ;;  %v2531_v17 = vld [vmem:[%s2952_s3 + $0x200] sm:$0xff]  }
 0x10f   : > { %2212 = vmatmul.mubr.bf16.vlgmr.msra.gmra.mrb[8].mxu0 %v417_v24  ;;  %2315 = vmatprep.subr.bf16.mxu1 %v2500_v21 }
 0x110   : > { %2215 = vmatprep.mubr.bf16.mxu0 %v2772_v29  ;;  %2220 = vmatpush3.bf16.msra.mxu0 %v2499_v18  ;;  %v850_v18 = vpack.c.bf16 %v2763_v26, %v2757_v22  ;;  %v2533_v22 = vld [vmem:[%s2952_s3 + $0x210] sm:$0xff]   ;;  %v1599_v26 = vld [vmem:[#allocation2 + $0xe1] sm:$0xff] }
 0x111   : > { %2308 = vmatmul.mubr.bf16.vlgmr.msra.gmra.mrb[0].mxu1 %v1150_v31  ;;  %2221 = vmatprep.subr.bf16.mxu0 %v2501_v28  ;;  %v1603_v27 = vpack.c.bf16 %v1599_v26, %v2798_v41 }
 0x112   : > { %2311 = vmatprep.mubr.bf16.mxu1 %v1151_v34  ;;  %2316 = vmatpush3.bf16.msra.mxu1 %v2500_v21  ;;  %v2532_v21 = vld [vmem:[%s2952_s3 + $0x208] sm:$0xff]  }
 0x113   : > { %2317 = vmatprep.subr.bf16.mxu1 %v2502_v33 }
 0x114   : > { %2222 = vmatpush3.bf16.msra.mxu0 %v2501_v28 }
 0x115   : > { %2223 = vmatprep.subr.bf16.mxu0 %v2503_v35 }
 0x116   : > { %2318 = vmatpush3.bf16.msra.mxu1 %v2502_v33 }
 0x117   : > { %2216 = vmatmul.mubr.bf16.gmra.mrb[12].mxu0 %v419_v42  ;;  %2319 = vmatprep.subr.bf16.mxu1 %v2504_v39 }
 0x118   : > { %2224 = vmatpush3.bf16.msra.mxu0 %v2503_v35  ;;  %2235 = vmatprep.mubr.bf16.mxu0 %v699_v44 }
 0x119   : > { %2312 = vmatmul.mubr.bf16.gmra.mrb[4].mxu1 %v1152_v46  ;;  %2225 = vmatprep.subr.bf16.mxu0 %v2505_v43 }
 0x11a   : > { %2320 = vmatpush3.bf16.msra.mxu1 %v2504_v39  ;;  %2331 = vmatprep.mubr.bf16.mxu1 %v417_v24  ;;  %v2538_v24 = vld [vmem:[%s2952_s3 + $0x238] sm:$0xff]  }
 0x11b   : > { %2321 = vmatprep.subr.bf16.mxu1 %v2506_v47 }
 0x11c   : > { %2226 = vmatpush3.bf16.msra.mxu0 %v2505_v43 }
 0x11d   : > { %2227 = vmatprep.subr.bf16.mxu0 %v2507_v48 }
 0x11e   : > { %2322 = vmatpush3.bf16.msra.mxu1 %v2506_v47 }
 0x11f   : > { %2323 = vmatprep.subr.bf16.mxu1 %v2508_v49 }
 0x120   : > { %2228 = vmatpush3.bf16.msra.mxu0 %v2507_v48 }
 0x121   : > { %2229 = vmatprep.subr.bf16.mxu0 %v2509_v50 }
 0x122   : > { %2324 = vmatpush3.bf16.msra.mxu1 %v2508_v49 }
 0x123   : > { %2325 = vmatprep.subr.bf16.mxu1 %v2510_v51 }
 0x124   : > { %2230 = vmatpush3.bf16.msra.mxu0 %v2509_v50 }
 0x125   : > { %2231 = vmatprep.subr.bf16.mxu0 %v2511_v52 }
 0x126   : > { %2326 = vmatpush3.bf16.msra.mxu1 %v2510_v51 }
 0x127   : > { %2327 = vmatprep.subr.bf16.mxu1 %v2512_v53 }
 0x128   : > { %2232 = vmatpush3.bf16.msra.mxu0 %v2511_v52 }
 0x129   : > { %2233 = vmatprep.subr.bf16.mxu0 %v2513_v54 }
 0x12a   : > { %2328 = vmatpush3.bf16.msra.mxu1 %v2512_v53 }
 0x12b   : > { %2329 = vmatprep.subr.bf16.mxu1 %v2514_v55 }
 0x12c   : > { %2234 = vmatpush3.bf16.msra.mxu0 %v2513_v54 }
 0x12d   : > { %2243 = vmatprep.subr.bf16.mxu0 %v2515_v56 }
 0x12e   : > { %2330 = vmatpush3.bf16.msra.mxu1 %v2514_v55 }
 0x12f   : > { %2236 = vmatmul.mubr.bf16.vlgmr.msra.gmra.mrb[8].mxu0 %v2843_v59  ;;  %2339 = vmatprep.subr.bf16.mxu1 %v2516_v57 }
 0x130   : > { %2239 = vmatprep.mubr.bf16.mxu0 %v2850_v61  ;;  %2244 = vmatpush3.bf16.msra.mxu0 %v2515_v56 }
 0x131   : > { %2332 = vmatmul.mubr.bf16.vlgmr.msra.gmra.mrb[0].mxu1 %v2772_v29  ;;  %2245 = vmatprep.subr.bf16.mxu0 %v2517_v60 }
 0x132   : > { %2335 = vmatprep.mubr.bf16.mxu1 %v419_v42  ;;  %2340 = vmatpush3.bf16.msra.mxu1 %v2516_v57 }
 0x133   : > { %2341 = vmatprep.subr.bf16.mxu1 %v2518_v63 }
 0x134   : > { %2246 = vmatpush3.bf16.msra.mxu0 %v2517_v60 }
 0x135   : > { %2247 = vmatprep.subr.bf16.mxu0 %v2519_v1 }
 0x136   : > { %2342 = vmatpush3.bf16.msra.mxu1 %v2518_v63 }
 0x137   : > { %2240 = vmatmul.mubr.bf16.gmra.mrb[12].mxu0 %v2866_v6  ;;  %2343 = vmatprep.subr.bf16.mxu1 %v2520_v3 }
 0x138   : > { %2248 = vmatpush3.bf16.msra.mxu0 %v2519_v1  ;;  %2259 = vmatprep.mubr.bf16.mxu0 %v849_v8 }
 0x139   : > { %2336 = vmatmul.mubr.bf16.gmra.mrb[4].mxu1 %v1303_v9  ;;  %2249 = vmatprep.subr.bf16.mxu0 %v2521_v7 }
 0x13a   : > { %2344 = vmatpush3.bf16.msra.mxu1 %v2520_v3  ;;  %2355 = vmatprep.mubr.bf16.mxu1 %v2683_v45  ;;  %v2527_v45 = vld [vmem:[%s2952_s3 + $0xf0] sm:$0xff]  }
 0x13b   : > { %2345 = vmatprep.subr.bf16.mxu1 %v2522_v10 }
 0x13c   : > { %2250 = vmatpush3.bf16.msra.mxu0 %v2521_v7 }
 0x13d   : > { %2251 = vmatprep.subr.bf16.mxu0 %v2523_v11 }
 0x13e   : > { %2346 = vmatpush3.bf16.msra.mxu1 %v2522_v10 }
 0x13f   : > { %2347 = vmatprep.subr.bf16.mxu1 %v2524_v0 }
 0x140   : > { %2252 = vmatpush3.bf16.msra.mxu0 %v2523_v11 }
 0x141   : > { %2253 = vmatprep.subr.bf16.mxu0 %v2525_v12 }
 0x142   : > { %2348 = vmatpush3.bf16.msra.mxu1 %v2524_v0 }
 0x143   : > { %2349 = vmatprep.subr.bf16.mxu1 %v2526_v13 }
 0x144   : > { %2254 = vmatpush3.bf16.msra.mxu0 %v2525_v12 }
 0x145   : > { %2255 = vmatprep.subr.bf16.mxu0 %v2527_v45 }
 0x146   : > { %2350 = vmatpush3.bf16.msra.mxu1 %v2526_v13 }
 0x147   : > { %2351 = vmatprep.subr.bf16.mxu1 %v2528_v14 }
 0x148   : > { %2256 = vmatpush3.bf16.msra.mxu0 %v2527_v45 }
 0x149   : > { %2257 = vmatprep.subr.bf16.mxu0 %v2529_v15 }
 0x14a   : > { %2352 = vmatpush3.bf16.msra.mxu1 %v2528_v14 }
 0x14b   : > { %2353 = vmatprep.subr.bf16.mxu1 %v2530_v16 }
 0x14c   : > { %2258 = vmatpush3.bf16.msra.mxu0 %v2529_v15 }
 0x14e   : > { %2354 = vmatpush3.bf16.msra.mxu1 %v2530_v16 }
 0x14f   : > { %2260 = vmatmul.mubr.bf16.vlgmr.msra.gmra.mrb[8].mxu0 %v850_v18  ;;  %2363 = vmatprep.subr.bf16.mxu1 %v2531_v17 }
 0x150   : > { %2263 = vmatprep.mubr.bf16.mxu0 %v851_v19 }
 0x151   : > { %2356 = vmatmul.mubr.bf16.vlgmr.msra.gmra.mrb[0].mxu1 %v2700_v62  ;;  %v2534_v62 = vld [vmem:[%s2952_s3 + $0x218] sm:$0xff]  }
 0x152   : > { %2359 = vmatprep.mubr.bf16.mxu1 %v2707_v2  ;;  %2364 = vmatpush3.bf16.msra.mxu1 %v2531_v17  ;;  %v2535_v2 = vld [vmem:[%s2952_s3 + $0x220] sm:$0xff]  }
 0x153   : > { %2365 = vmatprep.subr.bf16.mxu1 %v2532_v21 }
 0x156   : > { %2366 = vmatpush3.bf16.msra.mxu1 %v2532_v21 }
 0x157   : > { %2264 = vmatmul.mubr.bf16.gmra.mrb[12].mxu0 %v852_v23  ;;  %2367 = vmatprep.subr.bf16.mxu1 %v2533_v22 }
 0x159   : > { %2360 = vmatmul.mubr.bf16.gmra.mrb[4].mxu1 %v1453_v20 }
 0x15a   : > { %2368 = vmatpush3.bf16.msra.mxu1 %v2533_v22  ;;  %2379 = vmatprep.mubr.bf16.mxu1 %v2843_v59 }
 0x15b   : > { %2369 = vmatprep.subr.bf16.mxu1 %v2534_v62 }
 0x15e   : > { %2370 = vmatpush3.bf16.msra.mxu1 %v2534_v62 }
 0x15f   : > { %2371 = vmatprep.subr.bf16.mxu1 %v2535_v2 }
 0x162   : > { %2372 = vmatpush3.bf16.msra.mxu1 %v2535_v2 }
 0x163   : > { %2373 = vmatprep.subr.bf16.mxu1 %v2536_v25 }
 0x166   : > { %2374 = vmatpush3.bf16.msra.mxu1 %v2536_v25 }
 0x167   : > { %2375 = vmatprep.subr.bf16.mxu1 %v2537_v58 }
 0x16a   : > { %2376 = vmatpush3.bf16.msra.mxu1 %v2537_v58 }
 0x16b   : > { %2377 = vmatprep.subr.bf16.mxu1 %v2538_v24 }
 0x16e   : > { %2378 = vmatpush3.bf16.msra.mxu1 %v2538_v24 }
 0x171   : > { %2380 = vmatmul.mubr.bf16.vlgmr.msra.gmra.mrb[0].mxu1 %v2850_v61 }
 0x172   : > { %2383 = vmatprep.mubr.bf16.mxu1 %v2866_v6 }
 0x179   : > { %2384 = vmatmul.mubr.bf16.gmra.mrb[4].mxu1 %v1603_v27 }
 0x222   : > { %v2261_v28 = vpop.f32.mrb[8].mxu0 }
 0x223   : > { %v952_v29 = vpop.f32.mrb[9].mxu0 }
 0x224   : > { %v2262_v30 = vpop.f32.mrb[10].mxu0 }
 0x225   : > { %v955_v31 = vpop.f32.mrb[11].mxu0 }
 0x22a   : > { %v2265_v32 = vpop.f32.mrb[12].mxu0 }
 0x22b   : > { %v968_v33 = vpop.f32.mrb[13].mxu0 }
 0x22c   : > { %v2266_v34 = vpop.f32.mrb[14].mxu0 }
 0x22d   : > { %v971_v35 = vpop.f32.mrb[15].mxu0 }
 0x244   : > { %v2381_v36 = vpop.f32.mrb[0].mxu1 }
 0x245   : > { %v2387_v38 = vadd.f32 %v2381_v36, %v2261_v28  ;;  %v1703_v39 = vpop.f32.mrb[1].mxu1 }
 0x246   : > { %v2388_v40 = vadd.f32 %v1703_v39, %v952_v29  ;;  %v2382_v41 = vpop.f32.mrb[2].mxu1 }
 0x247   : > { %v1751_v42 = vadd.f32 %v2387_v38, %v2040_v37  ;;  %v2389_v43 = vadd.f32 %v2382_v41, %v2262_v30  ;;  %v1706_v44 = vpop.f32.mrb[3].mxu1 }
 0x248   : > { %v1749_v46 = vadd.f32 %v2388_v40, %v2040_v37  ;;  %v2390_v47 = vadd.f32 %v1706_v44, %v955_v31 }
 0x249   : > { %1759 = vst [vmem:[%s224_s16 + $0x10] sm:$0xff] %v1751_v42  ;;  %v1752_v48 = vadd.f32 %v2389_v43, %v2040_v37 }
 0x24a   : > { %1757 = vst [vmem:[%s224_s16] sm:$0xff] %v1749_v46  ;;  %v1750_v49 = vadd.f32 %v2390_v47, %v2040_v37 }
 0x24b   : > { %1760 = vst [vmem:[%s224_s16 + $0x18] sm:$0xff] %v1752_v48 }
 0x24c   : > { %1758 = vst [vmem:[%s224_s16 + $0x8] sm:$0xff] %v1750_v49  ;;  %v2385_v50 = vpop.f32.mrb[4].mxu1 }
 0x24d   : > { %v2391_v51 = vadd.f32 %v2385_v50, %v2265_v32  ;;  %v1719_v52 = vpop.f32.mrb[5].mxu1 }
 0x24e   : > { %v2392_v53 = vadd.f32 %v1719_v52, %v968_v33  ;;  %v2386_v54 = vpop.f32.mrb[6].mxu1 }
 0x24f   : > { %v1755_v55 = vadd.f32 %v2391_v51, %v2040_v37  ;;  %v2393_v56 = vadd.f32 %v2386_v54, %v2266_v34  ;;  %v1722_v57 = vpop.f32.mrb[7].mxu1 }
 0x250   : > { %v1753_v59 = vadd.f32 %v2392_v53, %v2040_v37  ;;  %v2394_v60 = vadd.f32 %v1722_v57, %v971_v35 }
 0x251   : > { %1763 = vst [vmem:[%s224_s16 + $0x30] sm:$0xff] %v1755_v55  ;;  %v1756_v61 = vadd.f32 %v2393_v56, %v2040_v37 }
 0x252   : > { %1761 = vst [vmem:[%s224_s16 + $0x20] sm:$0xff] %v1753_v59  ;;  %v1754_v63 = vadd.f32 %v2394_v60, %v2040_v37 }
 0x253   : > { %1764 = vst [vmem:[%s224_s16 + $0x38] sm:$0xff] %v1756_v61 }
 0x254   : > { %1762 = vst [vmem:[%s224_s16 + $0x28] sm:$0xff] %v1754_v63 }
 0x255 PF: > { %s15_s18 = sadd.s32 1, %s2545_s18  }
 0x256   : > { %p12_p4 = scmp.ge.s32.totalorder %s15_s18, 4  }
 0x258   :  { %14 = sbr.rel (!%p12_p4) target bundleno = 1 (0x1), region = 80 }

</bundles_post_ra>
